<compile_context>
chip_gen: v7x
topology: tpu7x:2x2x1
jax: 0.10.0
libtpu: 0.0.40
codegen_flags: <defaults>
</compile_context>

<pallas_src>
import functools

import jax
import jax.numpy as jnp
from jax.experimental import pallas as pl
from jax.experimental.pallas import tpu as pltpu

LANE = 128  # vreg lane width; pad only the VMEM-internal / weight dims to this


def _round_up(n, m):
    return ((n + m - 1) // m) * m


def _cdiv(a, b):
    return (a + b - 1) // b


def generator_kernel(x_ref, w1_ref, b1_ref, w2_ref, b2_ref, o_ref, xpad_ref):
    # x_ref:   [TB, d_in]    true-width input tile (d_in = 24)
    # w1_ref:  [128, 128]    b1_ref: [1, 128]   (in/hidden zero-padded to 128)
    # w2_ref:  [128, 128]    b2_ref: [1, 128]   (hidden/out zero-padded to 128)
    # o_ref:   [TB, d_out]   true-width f32 output tile (d_out = 24)
    # xpad_ref:[TB, 128]     VMEM scratch: lane-padded (and possibly bf16) x
    d_in = x_ref.shape[1]
    d_out = o_ref.shape[1]

    # Lane-pad x to 128 inside the kernel (zero fill + masked sub-lane store).
    xpad_ref[...] = jnp.zeros_like(xpad_ref)
    xpad_ref[:, :d_in] = x_ref[...].astype(xpad_ref.dtype)
    x = xpad_ref[...]

    h = jnp.dot(x, w1_ref[...], preferred_element_type=jnp.float32)   # MXU, f32 acc
    h = jnp.maximum(h + b1_ref[...], 0.0)                             # bias + ReLU in f32
    h = h.astype(w2_ref.dtype)                                        # bf16 path feeds MXU in bf16
    y = jnp.dot(h, w2_ref[...], preferred_element_type=jnp.float32)   # MXU, f32 acc
    y = jnp.maximum(y + b2_ref[...], 0.0)                             # bias + ReLU in f32

    # Store only the real output lanes (padded lanes are exact zeros anyway).
    o_ref[...] = y[:, :d_out].astype(o_ref.dtype)


def _pad_to(a, shape):
    return jnp.pad(a, [(0, t - s) for s, t in zip(a.shape, shape)])


@functools.partial(jax.jit, static_argnames=("block_b", "use_bf16"))
def generator_forward(x, w1, b1, w2, b2, *, block_b=2048, use_bf16=False):
    """y = relu(relu(x @ w1 + b1) @ w2 + b2), matching nn.Linear(x) = x @ W.T + b
    with weights stored pre-transposed as [in_features, out_features]."""
    B, d_in = x.shape
    h_dim = w1.shape[1]
    d_out = w2.shape[1]
    assert w1.shape[0] == d_in and w2.shape[0] == h_dim

    # Batch tile: multiple of 128 rows (whole MXU passes, satisfies (8,128) and
    # bf16 sublane packing).  Ensure >= 2 parallel tiles so v7x's 2 TensorCores
    # both get work (and the pipeline overlaps DMA with compute).
    tb = _round_up(min(block_b, B), LANE)
    if B > LANE and _round_up(B, tb) // tb < 2:
        tb = _round_up(_cdiv(B, 2), LANE)
    b_pad = _round_up(B, tb)
    n_tiles = b_pad // tb

    # x stays at its true lane width; only pad batch rows to a tile multiple.
    xp = _pad_to(x, (b_pad, d_in))

    # Weights/biases are tiny: pad once to lane-dense 128x128 / 1x128 and keep
    # them VMEM-resident across all grid steps (index_map -> (0, 0)).
    w_dtype = jnp.bfloat16 if use_bf16 else xp.dtype
    w1p = _pad_to(w1.astype(w_dtype), (LANE, LANE))
    w2p = _pad_to(w2.astype(w_dtype), (LANE, LANE))
    b1p = _pad_to(b1.reshape(1, -1).astype(jnp.float32), (1, LANE))
    b2p = _pad_to(b2.reshape(1, -1).astype(jnp.float32), (1, LANE))

    mxu_dtype = jnp.bfloat16 if use_bf16 else jnp.float32

    # Real streamed bytes: x + out at true width, weights/biases counted once.
    bytes_accessed = (xp.size * xp.dtype.itemsize
                      + w1p.size * w1p.dtype.itemsize
                      + w2p.size * w2p.dtype.itemsize
                      + b1p.size * 4 + b2p.size * 4
                      + b_pad * d_out * 4)
    cost = pl.CostEstimate(
        flops=2 * 2 * b_pad * LANE * LANE,   # two padded [tb,128]x[128,128] MXU passes per row
        transcendentals=0,
        bytes_accessed=bytes_accessed,
    )

    grid_spec = pltpu.PrefetchScalarGridSpec(
        num_scalar_prefetch=0,
        grid=(n_tiles,),
        in_specs=[
            pl.BlockSpec((tb, d_in), lambda i: (i, 0)),    # x: true width, streamed per tile
            pl.BlockSpec((LANE, LANE), lambda i: (0, 0)),  # w1: VMEM-resident
            pl.BlockSpec((1, LANE), lambda i: (0, 0)),     # b1: VMEM-resident
            pl.BlockSpec((LANE, LANE), lambda i: (0, 0)),  # w2: VMEM-resident
            pl.BlockSpec((1, LANE), lambda i: (0, 0)),     # b2: VMEM-resident
        ],
        out_specs=pl.BlockSpec((tb, d_out), lambda i: (i, 0)),  # out: true width
        scratch_shapes=[pltpu.VMEM((tb, LANE), mxu_dtype)],     # lane-padded x staging
    )

    out = pl.pallas_call(
        generator_kernel,
        out_shape=jax.ShapeDtypeStruct((b_pad, d_out), jnp.float32),
        grid_spec=grid_spec,
        compiler_params=pltpu.CompilerParams(
            dimension_semantics=("parallel",),   # batch tiles across v7x's 2 TCs
        ),
        cost_estimate=cost,
    )(xp, w1p, b1p, w2p, b2p)

    # Padded batch rows would contain relu(bias); drop them when present.
    if b_pad != B:
        out = out[:B]
    return out


def init_params(key, input_dim, hidden_dim, output_dim):
    """Deterministic PyTorch-style (Kaiming-uniform-ish) init; weights stored [in, out]."""
    k1, k2, k3, k4 = jax.random.split(key, 4)
    lim1 = 1.0 / jnp.sqrt(input_dim)
    lim2 = 1.0 / jnp.sqrt(hidden_dim)
    w1 = jax.random.uniform(k1, (input_dim, hidden_dim), jnp.float32, -lim1, lim1)
    b1 = jax.random.uniform(k2, (1, hidden_dim), jnp.float32, -lim1, lim1)
    w2 = jax.random.uniform(k3, (hidden_dim, output_dim), jnp.float32, -lim2, lim2)
    b2 = jax.random.uniform(k4, (1, output_dim), jnp.float32, -lim2, lim2)
    return w1, b1, w2, b2


if __name__ == "__main__":
    # Shapes consistent with the module: input_dim == output_dim (credit-card
    # table has 24 feature columns), hidden width fixed at 12.  Batch 512 is
    # small but large enough that the wrapper splits it into 2 parallel tiles.
    batch = 512
    input_dim = 24
    hidden_dim = 12
    output_dim = 24

    key = jax.random.PRNGKey(0)
    kx, kp = jax.random.split(key)
    x = jax.random.uniform(kx, (batch, input_dim), jnp.float32)  # MinMax-scaled-like inputs in [0,1)
    w1, b1, w2, b2 = init_params(kp, input_dim, hidden_dim, output_dim)

    # Pure-JAX reference of the forward semantics.
    ref = jnp.maximum(jnp.maximum(x @ w1 + b1, 0.0) @ w2 + b2, 0.0)

    # f32 path (exact w.r.t. padding: padded lanes/rows contribute exact zeros / are dropped).
    out = generator_forward(x, w1, b1, w2, b2, use_bf16=False)
    out = jax.block_until_ready(out)
    assert out.shape == (batch, output_dim)
    assert jnp.allclose(out, ref, atol=1e-4, rtol=1e-4), "f32 mismatch vs reference"

    # bf16-MXU path (bandwidth/throughput option; f32 accumulate + f32 bias/ReLU epilogue).
    out_bf16 = generator_forward(x, w1, b1, w2, b2, use_bf16=True)
    out_bf16 = jax.block_until_ready(out_bf16)
    assert jnp.allclose(out_bf16, ref, atol=2e-2, rtol=2e-2), "bf16 mismatch vs reference"

    print("KERNEL_OK")
</pallas_src>

<mosaic_0001>
module attributes {stable_mosaic.version = 11 : i64} {
  func.func @generator_kernel(%arg0: i32, %arg1: memref<256x24xf32, #tpu.memory_space<vmem>>, %arg2: memref<128x128xf32, #tpu.memory_space<vmem>>, %arg3: memref<1x128xf32, #tpu.memory_space<vmem>>, %arg4: memref<128x128xf32, #tpu.memory_space<vmem>>, %arg5: memref<1x128xf32, #tpu.memory_space<vmem>>, %arg6: memref<256x24xf32, #tpu.memory_space<vmem>>, %arg7: memref<256x128xf32, #tpu.memory_space<vmem>>) attributes {dimension_semantics = [#tpu.dimension_semantics<parallel>], iteration_bounds = array<i64: 2>, scalar_prefetch = 0 : i64, scratch_operands = 1 : i64, tpu.core_type = #tpu.core_type<tc>, window_params = [{transform_indices = @transform_0, window_bounds = array<i64: 256, 24>}, {pipeline_mode = #tpu.pipeline_mode<synchronous>, transform_indices = @transform_1, window_bounds = array<i64: 128, 128>}, {pipeline_mode = #tpu.pipeline_mode<synchronous>, transform_indices = @transform_2, window_bounds = array<i64: 1, 128>}, {pipeline_mode = #tpu.pipeline_mode<synchronous>, transform_indices = @transform_3, window_bounds = array<i64: 128, 128>}, {pipeline_mode = #tpu.pipeline_mode<synchronous>, transform_indices = @transform_4, window_bounds = array<i64: 1, 128>}, {transform_indices = @transform_5, window_bounds = array<i64: 256, 24>}]} {
    %cst = arith.constant 0.000000e+00 : f32
    %0 = vector.broadcast %cst : f32 to vector<256x128xf32>
    %c0 = arith.constant 0 : index
    %c0_0 = arith.constant 0 : index
    %1 = vector.load %arg7[%c0, %c0_0] : memref<256x128xf32, #tpu.memory_space<vmem>>, vector<256x128xf32>
    tpu.vector_store %arg7[%c0, %c0_0], %0 {strides = array<i32>} : memref<256x128xf32, #tpu.memory_space<vmem>>, vector<256x128xf32>,
    %c0_1 = arith.constant 0 : index
    %c0_2 = arith.constant 0 : index
    %2 = vector.load %arg1[%c0_1, %c0_2] : memref<256x24xf32, #tpu.memory_space<vmem>>, vector<256x24xf32>
    %c0_3 = arith.constant 0 : index
    %c0_4 = arith.constant 0 : index
    %3 = vector.load %arg7[%c0_3, %c0_4] : memref<256x128xf32, #tpu.memory_space<vmem>>, vector<256x24xf32>
    tpu.vector_store %arg7[%c0_3, %c0_4], %2 {strides = array<i32>} : memref<256x128xf32, #tpu.memory_space<vmem>>, vector<256x24xf32>,
    %c0_5 = arith.constant 0 : index
    %c0_6 = arith.constant 0 : index
    %4 = vector.load %arg7[%c0_5, %c0_6] : memref<256x128xf32, #tpu.memory_space<vmem>>, vector<256x128xf32>
    %c0_7 = arith.constant 0 : index
    %c0_8 = arith.constant 0 : index
    %5 = vector.load %arg2[%c0_7, %c0_8] : memref<128x128xf32, #tpu.memory_space<vmem>>, vector<128x128xf32>
    %cst_9 = arith.constant dense<0.000000e+00> : vector<256x128xf32>
    %6 = tpu.matmul %4, %5, %cst_9 {dimension_numbers = #tpu.dot_dimension_numbers<[1], [0], [0], [1], [0, 0, 1, 1], [], []>} : vector<256x128xf32>, vector<128x128xf32>, vector<256x128xf32> -> vector<256x128xf32>
    %c0_10 = arith.constant 0 : index
    %c0_11 = arith.constant 0 : index
    %7 = vector.load %arg3[%c0_10, %c0_11] : memref<1x128xf32, #tpu.memory_space<vmem>>, vector<1x128xf32>
    %8 = vector.broadcast %7 : vector<1x128xf32> to vector<256x128xf32>
    %9 = arith.addf %6, %8 : vector<256x128xf32>
    %cst_12 = arith.constant 0.000000e+00 : f32
    %10 = vector.broadcast %cst_12 : f32 to vector<256x128xf32>
    %11 = arith.maximumf %9, %10 : vector<256x128xf32>
    %c0_13 = arith.constant 0 : index
    %c0_14 = arith.constant 0 : index
    %12 = vector.load %arg4[%c0_13, %c0_14] : memref<128x128xf32, #tpu.memory_space<vmem>>, vector<128x128xf32>
    %cst_15 = arith.constant dense<0.000000e+00> : vector<256x128xf32>
    %13 = tpu.matmul %11, %12, %cst_15 {dimension_numbers = #tpu.dot_dimension_numbers<[1], [0], [0], [1], [0, 0, 1, 1], [], []>} : vector<256x128xf32>, vector<128x128xf32>, vector<256x128xf32> -> vector<256x128xf32>
    %c0_16 = arith.constant 0 : index
    %c0_17 = arith.constant 0 : index
    %14 = vector.load %arg5[%c0_16, %c0_17] : memref<1x128xf32, #tpu.memory_space<vmem>>, vector<1x128xf32>
    %15 = vector.broadcast %14 : vector<1x128xf32> to vector<256x128xf32>
    %16 = arith.addf %13, %15 : vector<256x128xf32>
    %cst_18 = arith.constant 0.000000e+00 : f32
    %17 = vector.broadcast %cst_18 : f32 to vector<256x128xf32>
    %18 = arith.maximumf %16, %17 : vector<256x128xf32>
    %19 = vector.extract_strided_slice %18 {offsets = [0, 0], sizes = [256, 24], strides = [1, 1]} : vector<256x128xf32> to vector<256x24xf32>
    %c0_19 = arith.constant 0 : index
    %c0_20 = arith.constant 0 : index
    %20 = vector.load %arg6[%c0_19, %c0_20] : memref<256x24xf32, #tpu.memory_space<vmem>>, vector<256x24xf32>
    tpu.vector_store %arg6[%c0_19, %c0_20], %19 {strides = array<i32>} : memref<256x24xf32, #tpu.memory_space<vmem>>, vector<256x24xf32>,
    return
  }
  func.func @transform_0(%arg0: i32) -> (i32, i32) {
    %c0_i32 = arith.constant 0 : i32
    %c0_i32_0 = arith.constant 0 : i32
    return %arg0, %c0_i32 : i32, i32
  }
  func.func @transform_1(%arg0: i32) -> (i32, i32) {
    %c0_i32 = arith.constant 0 : i32
    %c0_i32_0 = arith.constant 0 : i32
    %c0_i32_1 = arith.constant 0 : i32
    return %c0_i32, %c0_i32_0 : i32, i32
  }
  func.func @transform_2(%arg0: i32) -> (i32, i32) {
    %c0_i32 = arith.constant 0 : i32
    %c0_i32_0 = arith.constant 0 : i32
    %c0_i32_1 = arith.constant 0 : i32
    return %c0_i32, %c0_i32_0 : i32, i32
  }
  func.func @transform_3(%arg0: i32) -> (i32, i32) {
    %c0_i32 = arith.constant 0 : i32
    %c0_i32_0 = arith.constant 0 : i32
    %c0_i32_1 = arith.constant 0 : i32
    return %c0_i32, %c0_i32_0 : i32, i32
  }
  func.func @transform_4(%arg0: i32) -> (i32, i32) {
    %c0_i32 = arith.constant 0 : i32
    %c0_i32_0 = arith.constant 0 : i32
    %c0_i32_1 = arith.constant 0 : i32
    return %c0_i32, %c0_i32_0 : i32, i32
  }
  func.func @transform_5(%arg0: i32) -> (i32, i32) {
    %c0_i32 = arith.constant 0 : i32
    %c0_i32_0 = arith.constant 0 : i32
    return %arg0, %c0_i32 : i32, i32
  }
}

</mosaic_0001>

<bundles_post_ra>
// kernel: generator_forward.1
= control target key start
LH: loop header
LB: loop body
LE: loop exit
PB: predicated region body
PF: predicated region fallthrough
CT: control target
= control target key end

     0   :  { %s1386_s18 = smov 0   ;;  %s1718_s0 = inlined_call_operand.vmem [shape: f32[512,24], index: 0, kind: input, shape index: {}]   ;;  %s1719_s1 = inlined_call_operand.vmem [shape: f32[128,128], index: 1, kind: input, shape index: {}]   ;;  %s1720_s2 = inlined_call_operand.vmem [shape: f32[1,128], index: 2, kind: input, shape index: {}]   ;;  %s1721_s3 = inlined_call_operand.vmem [shape: f32[128,128], index: 3, kind: input, shape index: {}]   ;;  %s1722_s4 = inlined_call_operand.vmem [shape: f32[1,128], index: 4, kind: input, shape index: {}]   ;;  %s1723_s5 = inlined_call_operand.vmem [shape: f32[512,24], index: 5, kind: output, shape index: {}]  }
   0x1 LB: > { %s1005_s19 = sadd.s32 4294967295, %s1353_s18   ;;  %p1009_p0 = scmp.ge.s32.totalorder %s1353_s18, 1  ;;  %s1353_s18 = sphi %s1386_s18, %s15_s18  }
   0x2   : > { %p188_p1 = scmp.lt.s32.totalorder %s1353_s18, 3 }
   0x4   : > { %p189_p2 = pnand %p1009_p0, %p188_p1 }
   0x5   : > { %v357_v0 = vld [vmem:[%s1719_s1] sm:$0xff] (!%p189_p2)  ;;  %v358_v1 = vld [vmem:[%s1719_s1 + $0x8] sm:$0xff] (!%p189_p2)  ;;  %v359_v2 = vld [vmem:[%s1719_s1 + $0x10] sm:$0xff] (!%p189_p2)  ;;  %s1403_s26 = sshll.u32 (!%p189_p2), %s1005_s19, 5  ;;  %v1355_v5 = vmov (!%p189_p2), 0.0   ;;  %vm292_vm0 = vcmask (!%p189_p2), 195584  }
   0x6   : > { %192 = sbr.rel (%p189_p2) target bundleno = 536 (0x218), region = 40  ;;  %v1274_v3 = vpack.c.bf16 (!%p189_p2), %v358_v1, %v357_v0  ;;  %v360_v4 = vld [vmem:[%s1719_s1 + $0x18] sm:$0xff] (!%p189_p2)  ;;  %p217_p3 = scmp.lt.s32.totalorder (!%p189_p2), %s1403_s26, 63  ;;  %228 = vst [vmem:[#allocation2] sm:$0xff] (!%p189_p2), %v1355_v5  ;;  %229 = vst [vmem:[#allocation2 + $0x8] sm:$0xff] (!%p189_p2), %v1355_v5  ;;  %v361_v7 = vld [vmem:[%s1719_s1 + $0x20] sm:$0xff] (!%p189_p2) }
   0x7   : > { %230 = vst [vmem:[#allocation2 + $0x10] sm:$0xff] (!%p189_p2), %v1355_v5  ;;  %231 = vst [vmem:[#allocation2 + $0x18] sm:$0xff] (!%p189_p2), %v1355_v5  ;;  %v1278_v6 = vpack.c.bf16 (!%p189_p2), %v360_v4, %v359_v2  ;;  %v362_v8 = vld [vmem:[%s1719_s1 + $0x28] sm:$0xff] (!%p189_p2)  ;;  %v363_v10 = vld [vmem:[%s1719_s1 + $0x30] sm:$0xff] (!%p189_p2) }
   0x8   : > { %232 = vst [vmem:[#allocation2 + $0x20] sm:$0xff] (!%p189_p2), %v1355_v5  ;;  %233 = vst [vmem:[#allocation2 + $0x28] sm:$0xff] (!%p189_p2), %v1355_v5  ;;  %1275 = vmatprep.subr.bf16.mxu0 (!%p189_p2), %v1274_v3  ;;  %v1282_v9 = vpack.c.bf16 (!%p189_p2), %v362_v8, %v361_v7  ;;  %v637_v11 = vld [vmem:[%s1721_s3] sm:$0xff] (!%p189_p2)  ;;  %v638_v12 = vld [vmem:[%s1721_s3 + $0x8] sm:$0xff] (!%p189_p2) }
   0x9   : > { %234 = vst [vmem:[#allocation2 + $0x30] sm:$0xff] (!%p189_p2), %v1355_v5  ;;  %235 = vst [vmem:[#allocation2 + $0x38] sm:$0xff] (!%p189_p2), %v1355_v5  ;;  %1277 = vmatpush3.bf16.msra.mxu0 (!%p189_p2), %v1274_v3  ;;  %v364_v13 = vld [vmem:[%s1719_s1 + $0x38] sm:$0xff] (!%p189_p2)  ;;  %v1306_v14 = vpack.c.bf16 (!%p189_p2), %v638_v12, %v637_v11  ;;  %v639_v15 = vld [vmem:[%s1721_s3 + $0x10] sm:$0xff] (!%p189_p2) }
   0xa   : > { %236 = vst [vmem:[#allocation2 + $0x40] sm:$0xff] (!%p189_p2), %v1355_v5  ;;  %237 = vst [vmem:[#allocation2 + $0x48] sm:$0xff] (!%p189_p2), %v1355_v5  ;;  %1279 = vmatprep.subr.bf16.mxu0 (!%p189_p2), %v1278_v6  ;;  %v640_v16 = vld [vmem:[%s1721_s3 + $0x18] sm:$0xff] (!%p189_p2)  ;;  %v365_v21 = vld [vmem:[%s1719_s1 + $0x40] sm:$0xff] (!%p189_p2)  ;;  %v1286_v26 = vpack.c.bf16 (!%p189_p2), %v364_v13, %v363_v10 }
   0xb   : > { %238 = vst [vmem:[#allocation2 + $0x50] sm:$0xff] (!%p189_p2), %v1355_v5  ;;  %239 = vst [vmem:[#allocation2 + $0x58] sm:$0xff] (!%p189_p2), %v1355_v5  ;;  %v1310_v20 = vpack.c.bf16 (!%p189_p2), %v640_v16, %v639_v15  ;;  %v366_v22 = vld [vmem:[%s1719_s1 + $0x48] sm:$0xff] (!%p189_p2)  ;;  %1307 = vmatprep.subr.bf16.mxu1 (!%p189_p2), %v1306_v14  ;;  %v367_v36 = vld [vmem:[%s1719_s1 + $0x50] sm:$0xff] (!%p189_p2) }
   0xc   : > { %240 = vst [vmem:[#allocation2 + $0x60] sm:$0xff] (!%p189_p2), %v1355_v5  ;;  %241 = vst [vmem:[#allocation2 + $0x68] sm:$0xff] (!%p189_p2), %v1355_v5  ;;  %1309 = vmatpush3.bf16.msra.mxu1 (!%p189_p2), %v1306_v14  ;;  %v368_v37 = vld [vmem:[%s1719_s1 + $0x58] sm:$0xff] (!%p189_p2)  ;;  %v1290_v41 = vpack.c.bf16 (!%p189_p2), %v366_v22, %v365_v21  ;;  %v369_v50 = vld [vmem:[%s1719_s1 + $0x60] sm:$0xff] (!%p189_p2) }
   0xd   : > { %242 = vst [vmem:[#allocation2 + $0x70] sm:$0xff] %v1355_v5  ;;  %243 = vst [vmem:[#allocation2 + $0x78] sm:$0xff] %v1355_v5  ;;  %s1725_s26 = smov (!%p217_p3, %s1403_s26), 63  ;;  %1281 = vmatpush3.bf16.msra.mxu0 %v1278_v6  ;;  %1311 = vmatprep.subr.bf16.mxu1 %v1310_v20  ;;  %v1294_v49 = vpack.c.bf16 %v368_v37, %v367_v36  ;;  %v370_v51 = vld [vmem:[%s1719_s1 + $0x68] sm:$0xff]  ;;  %v371_v53 = vld [vmem:[%s1719_s1 + $0x70] sm:$0xff] }
   0xe   : > { %244 = vst [vmem:[#allocation2 + $0x80] sm:$0xff] %v1355_v5  ;;  %245 = vst [vmem:[#allocation2 + $0x88] sm:$0xff] %v1355_v5  ;;  %s1011_s10 = sshll.u32 %s1725_s26, 3  ;;  %1283 = vmatprep.subr.bf16.mxu0 %v1282_v9  ;;  %v1298_v52 = vpack.c.bf16 %v370_v51, %v369_v50  ;;  %v372_v54 = vld [vmem:[%s1719_s1 + $0x78] sm:$0xff]  ;;  %v641_v55 = vld [vmem:[%s1721_s3 + $0x20] sm:$0xff] }
   0xf   : > { %246 = vst [vmem:[#allocation2 + $0x90] sm:$0xff] %v1355_v5  ;;  %247 = vst [vmem:[#allocation2 + $0x98] sm:$0xff] %v1355_v5  ;;  %s1438_s20 = scalar_lea.vmem %s1718_s0, %s1011_s10  ;;  %v1302_v62 = vpack.c.bf16 %v372_v54, %v371_v53  ;;  %v642_v1 = vld [vmem:[%s1721_s3 + $0x28] sm:$0xff]  ;;  %v643_v3 = vld [vmem:[%s1721_s3 + $0x30] sm:$0xff]  ;;  %s1618_s29 = scalar_lea.vmem %s1723_s5, %s1011_s10 }
  0x10   : > { %248 = vst [vmem:[#allocation2 + $0xa0] sm:$0xff] %v1355_v5  ;;  %249 = vst [vmem:[#allocation2 + $0xa8] sm:$0xff] %v1355_v5  ;;  %v260_v17 = vld [vmem:[%s1438_s20] sm:$0xff]  ;;  %v261_v18 = vld [vmem:[%s1438_s20 + $0x8] sm:$0xff]  ;;  %1313 = vmatpush3.bf16.msra.mxu1 %v1310_v20  ;;  %v1314_v2 = vpack.c.bf16 %v642_v1, %v641_v55 }
  0x11   : > { %250 = vst [vmem:[#allocation2 + $0xb0] sm:$0xff] %v1355_v5  ;;  %251 = vst [vmem:[#allocation2 + $0xb8] sm:$0xff] %v1355_v5  ;;  %v262_v19 = vld [vmem:[%s1438_s20 + $0x10] sm:$0xff]  ;;  %v263_v23 = vld [vmem:[%s1438_s20 + $0x18] sm:$0xff]  ;;  %1285 = vmatpush3.bf16.msra.mxu0 %v1282_v9 }
  0x12   : > { %252 = vst [vmem:[#allocation2 + $0xc0] sm:$0xff] %v1355_v5  ;;  %253 = vst [vmem:[#allocation2 + $0xc8] sm:$0xff] %v1355_v5  ;;  %v264_v24 = vld [vmem:[%s1438_s20 + $0x20] sm:$0xff]  ;;  %v265_v25 = vld [vmem:[%s1438_s20 + $0x28] sm:$0xff]  ;;  %1287 = vmatprep.subr.bf16.mxu0 %v1286_v26  ;;  %1315 = vmatprep.subr.bf16.mxu1 %v1314_v2 }
  0x13   : > { %254 = vst [vmem:[#allocation2 + $0xd0] sm:$0xff] %v1355_v5  ;;  %255 = vst [vmem:[#allocation2 + $0xd8] sm:$0xff] %v1355_v5  ;;  %v266_v27 = vld [vmem:[%s1438_s20 + $0x30] sm:$0xff]  ;;  %v267_v28 = vld [vmem:[%s1438_s20 + $0x38] sm:$0xff] }
  0x14   : > { %256 = vst [vmem:[#allocation2 + $0xe0] sm:$0xff] %v1355_v5  ;;  %257 = vst [vmem:[#allocation2 + $0xe8] sm:$0xff] %v1355_v5  ;;  %v268_v29 = vld [vmem:[%s1438_s20 + $0x40] sm:$0xff]  ;;  %v269_v30 = vld [vmem:[%s1438_s20 + $0x48] sm:$0xff]  ;;  %1317 = vmatpush3.bf16.msra.mxu1 %v1314_v2 }
  0x15   : > { %258 = vst [vmem:[#allocation2 + $0xf0] sm:$0xff] %v1355_v5  ;;  %259 = vst [vmem:[#allocation2 + $0xf8] sm:$0xff] %v1355_v5  ;;  %v270_v31 = vld [vmem:[%s1438_s20 + $0x50] sm:$0xff]  ;;  %v271_v32 = vld [vmem:[%s1438_s20 + $0x58] sm:$0xff]  ;;  %1289 = vmatpush3.bf16.msra.mxu0 %v1286_v26 }
  0x16   : > { %293 = vst.msk [vmem:[#allocation2] sm:$0xff] %vm292_vm0, %v260_v17  ;;  %294 = vst.msk [vmem:[#allocation2 + $0x8] sm:$0xff] %vm292_vm0, %v261_v18  ;;  %v272_v33 = vld [vmem:[%s1438_s20 + $0x60] sm:$0xff]  ;;  %v273_v34 = vld [vmem:[%s1438_s20 + $0x68] sm:$0xff]  ;;  %1291 = vmatprep.subr.bf16.mxu0 %v1290_v41 }
  0x17   : > { %295 = vst.msk [vmem:[#allocation2 + $0x10] sm:$0xff] %vm292_vm0, %v262_v19  ;;  %296 = vst.msk [vmem:[#allocation2 + $0x18] sm:$0xff] %vm292_vm0, %v263_v23  ;;  %v274_v35 = vld [vmem:[%s1438_s20 + $0x70] sm:$0xff]  ;;  %v275_v38 = vld [vmem:[%s1438_s20 + $0x78] sm:$0xff] }
  0x18   : > { %297 = vst.msk [vmem:[#allocation2 + $0x20] sm:$0xff] %vm292_vm0, %v264_v24  ;;  %298 = vst.msk [vmem:[#allocation2 + $0x28] sm:$0xff] %vm292_vm0, %v265_v25  ;;  %v276_v39 = vld [vmem:[%s1438_s20 + $0x80] sm:$0xff]  ;;  %v277_v40 = vld [vmem:[%s1438_s20 + $0x88] sm:$0xff] }
  0x19   : > { %299 = vst.msk [vmem:[#allocation2 + $0x30] sm:$0xff] %vm292_vm0, %v266_v27  ;;  %300 = vst.msk [vmem:[#allocation2 + $0x38] sm:$0xff] %vm292_vm0, %v267_v28  ;;  %v278_v42 = vld [vmem:[%s1438_s20 + $0x90] sm:$0xff]  ;;  %v279_v43 = vld [vmem:[%s1438_s20 + $0x98] sm:$0xff]  ;;  %1293 = vmatpush3.bf16.msra.mxu0 %v1290_v41 }
  0x1a   : > { %301 = vst.msk [vmem:[#allocation2 + $0x40] sm:$0xff] %vm292_vm0, %v268_v29  ;;  %302 = vst.msk [vmem:[#allocation2 + $0x48] sm:$0xff] %vm292_vm0, %v269_v30  ;;  %v280_v44 = vld [vmem:[%s1438_s20 + $0xa0] sm:$0xff]  ;;  %v281_v45 = vld [vmem:[%s1438_s20 + $0xa8] sm:$0xff]  ;;  %1295 = vmatprep.subr.bf16.mxu0 %v1294_v49 }
  0x1b   : > { %303 = vst.msk [vmem:[#allocation2 + $0x50] sm:$0xff] %vm292_vm0, %v270_v31  ;;  %304 = vst.msk [vmem:[#allocation2 + $0x58] sm:$0xff] %vm292_vm0, %v271_v32  ;;  %v282_v46 = vld [vmem:[%s1438_s20 + $0xb0] sm:$0xff]  ;;  %v283_v47 = vld [vmem:[%s1438_s20 + $0xb8] sm:$0xff] }
  0x1c   : > { %305 = vst.msk [vmem:[#allocation2 + $0x60] sm:$0xff] %vm292_vm0, %v272_v33  ;;  %306 = vst.msk [vmem:[#allocation2 + $0x68] sm:$0xff] %vm292_vm0, %v273_v34  ;;  %v284_v56 = vld [vmem:[%s1438_s20 + $0xc0] sm:$0xff]  ;;  %v285_v57 = vld [vmem:[%s1438_s20 + $0xc8] sm:$0xff] }
  0x1d   : > { %307 = vst.msk [vmem:[#allocation2 + $0x70] sm:$0xff] %vm292_vm0, %v274_v35  ;;  %308 = vst.msk [vmem:[#allocation2 + $0x78] sm:$0xff] %vm292_vm0, %v275_v38  ;;  %v325_v48 = vld [vmem:[#allocation2] sm:$0xff]  ;;  %v286_v58 = vld [vmem:[%s1438_s20 + $0xd0] sm:$0xff]  ;;  %1297 = vmatpush3.bf16.msra.mxu0 %v1294_v49 }
  0x1e   : > { %309 = vst.msk [vmem:[#allocation2 + $0x80] sm:$0xff] %vm292_vm0, %v276_v39  ;;  %310 = vst.msk [vmem:[#allocation2 + $0x88] sm:$0xff] %vm292_vm0, %v277_v40  ;;  %1146 = vmatprep.mubr.f32.mxu0 %v325_v48  ;;  %v287_v59 = vld [vmem:[%s1438_s20 + $0xd8] sm:$0xff]  ;;  %v288_v60 = vld [vmem:[%s1438_s20 + $0xe0] sm:$0xff]  ;;  %1299 = vmatprep.subr.bf16.mxu0 %v1298_v52 }
  0x1f   : > { %311 = vst.msk [vmem:[#allocation2 + $0x90] sm:$0xff] %vm292_vm0, %v278_v42  ;;  %312 = vst.msk [vmem:[#allocation2 + $0x98] sm:$0xff] %vm292_vm0, %v279_v43  ;;  %v289_v61 = vld [vmem:[%s1438_s20 + $0xe8] sm:$0xff]  ;;  %v290_v63 = vld [vmem:[%s1438_s20 + $0xf0] sm:$0xff] }
  0x20   : > { %313 = vst.msk [vmem:[#allocation2 + $0xa0] sm:$0xff] %vm292_vm0, %v280_v44  ;;  %314 = vst.msk [vmem:[#allocation2 + $0xa8] sm:$0xff] %vm292_vm0, %v281_v45  ;;  %v291_v0 = vld [vmem:[%s1438_s20 + $0xf8] sm:$0xff]  ;;  %v645_v6 = vld [vmem:[%s1721_s3 + $0x40] sm:$0xff] }
  0x21   : > { %315 = vst.msk [vmem:[#allocation2 + $0xb0] sm:$0xff] %vm292_vm0, %v282_v46  ;;  %316 = vst.msk [vmem:[#allocation2 + $0xb8] sm:$0xff] %vm292_vm0, %v283_v47  ;;  %v644_v4 = vld [vmem:[%s1721_s3 + $0x38] sm:$0xff]  ;;  %v646_v7 = vld [vmem:[%s1721_s3 + $0x48] sm:$0xff]  ;;  %1301 = vmatpush3.bf16.msra.mxu0 %v1298_v52 }
  0x22   : > { %317 = vst.msk [vmem:[#allocation2 + $0xc0] sm:$0xff] %vm292_vm0, %v284_v56  ;;  %318 = vst.msk [vmem:[#allocation2 + $0xc8] sm:$0xff] %vm292_vm0, %v285_v57  ;;  %v1318_v5 = vpack.c.bf16 %v644_v4, %v643_v3  ;;  %1303 = vmatprep.subr.bf16.mxu0 %v1302_v62  ;;  %v1322_v8 = vpack.c.bf16 %v646_v7, %v645_v6  ;;  %v647_v9 = vld [vmem:[%s1721_s3 + $0x50] sm:$0xff]  ;;  %v648_v10 = vld [vmem:[%s1721_s3 + $0x58] sm:$0xff] }
  0x23   : > { %319 = vst.msk [vmem:[#allocation2 + $0xd0] sm:$0xff] %vm292_vm0, %v286_v58  ;;  %320 = vst.msk [vmem:[#allocation2 + $0xd8] sm:$0xff] %vm292_vm0, %v287_v59  ;;  %v326_v11 = vld [vmem:[#allocation2 + $0x8] sm:$0xff]  ;;  %v327_v12 = vld [vmem:[#allocation2 + $0x10] sm:$0xff]  ;;  %v1326_v13 = vpack.c.bf16 %v648_v10, %v647_v9 }
  0x24   : > { %321 = vst.msk [vmem:[#allocation2 + $0xe0] sm:$0xff] %vm292_vm0, %v288_v60  ;;  %322 = vst.msk [vmem:[#allocation2 + $0xe8] sm:$0xff] %vm292_vm0, %v289_v61  ;;  %1319 = vmatprep.subr.bf16.mxu1 %v1318_v5  ;;  %v649_v14 = vld [vmem:[%s1721_s3 + $0x60] sm:$0xff]  ;;  %v650_v15 = vld [vmem:[%s1721_s3 + $0x68] sm:$0xff] }
  0x25   : > { %323 = vst.msk [vmem:[#allocation2 + $0xf0] sm:$0xff] %vm292_vm0, %v290_v63  ;;  %324 = vst.msk [vmem:[#allocation2 + $0xf8] sm:$0xff] %vm292_vm0, %v291_v0  ;;  %1305 = vmatpush3.bf16.msra.mxu0 %v1302_v62  ;;  %1321 = vmatpush3.bf16.msra.mxu1 %v1318_v5  ;;  %v328_v16 = vld [vmem:[#allocation2 + $0x18] sm:$0xff]  ;;  %v329_v17 = vld [vmem:[#allocation2 + $0x20] sm:$0xff]  ;;  %v1330_v18 = vpack.c.bf16 %v650_v15, %v649_v14 }
  0x26   : > { %1323 = vmatprep.subr.bf16.mxu1 %v1322_v8  ;;  %v330_v19 = vld [vmem:[#allocation2 + $0x28] sm:$0xff]  ;;  %v331_v20 = vld [vmem:[#allocation2 + $0x30] sm:$0xff]  ;;  %v332_v21 = vld [vmem:[#allocation2 + $0x38] sm:$0xff] }
  0x27   : > { %v333_v22 = vld [vmem:[#allocation2 + $0x40] sm:$0xff]  ;;  %v334_v23 = vld [vmem:[#allocation2 + $0x48] sm:$0xff]  ;;  %v335_v24 = vld [vmem:[#allocation2 + $0x50] sm:$0xff] }
  0x28   : > { %1147 = vmatmul.mubr.f32.vlgmr.msra.gmra.mrb[0].mxu0 %v326_v11  ;;  %v336_v25 = vld [vmem:[#allocation2 + $0x58] sm:$0xff]  ;;  %v337_v26 = vld [vmem:[#allocation2 + $0x60] sm:$0xff]  ;;  %v338_v27 = vld [vmem:[#allocation2 + $0x68] sm:$0xff] }
  0x29   : > { %1149 = vmatprep.mubr.f32.mxu0 %v327_v12  ;;  %1325 = vmatpush3.bf16.msra.mxu1 %v1322_v8  ;;  %v339_v28 = vld [vmem:[#allocation2 + $0x70] sm:$0xff]  ;;  %v340_v29 = vld [vmem:[#allocation2 + $0x78] sm:$0xff]  ;;  %v341_v30 = vld [vmem:[#allocation2 + $0x80] sm:$0xff] }
  0x2a   : > { %1327 = vmatprep.subr.bf16.mxu1 %v1326_v13  ;;  %v342_v31 = vld [vmem:[#allocation2 + $0x88] sm:$0xff]  ;;  %v343_v32 = vld [vmem:[#allocation2 + $0x90] sm:$0xff]  ;;  %v344_v33 = vld [vmem:[#allocation2 + $0x98] sm:$0xff] }
  0x2b   : > { %v345_v34 = vld [vmem:[#allocation2 + $0xa0] sm:$0xff]  ;;  %v346_v35 = vld [vmem:[#allocation2 + $0xa8] sm:$0xff]  ;;  %v347_v36 = vld [vmem:[#allocation2 + $0xb0] sm:$0xff] }
  0x2c   : > { %1150 = vmatmul.mubr.f32.gmra.mrb[2].mxu0 %v328_v16  ;;  %v348_v37 = vld [vmem:[#allocation2 + $0xb8] sm:$0xff]  ;;  %v349_v38 = vld [vmem:[#allocation2 + $0xc0] sm:$0xff]  ;;  %v350_v39 = vld [vmem:[#allocation2 + $0xc8] sm:$0xff] }
  0x2d   : > { %1152 = vmatprep.mubr.f32.mxu0 %v329_v17  ;;  %1329 = vmatpush3.bf16.msra.mxu1 %v1326_v13  ;;  %v351_v40 = vld [vmem:[#allocation2 + $0xd0] sm:$0xff]  ;;  %v352_v41 = vld [vmem:[#allocation2 + $0xd8] sm:$0xff]  ;;  %v353_v42 = vld [vmem:[#allocation2 + $0xe0] sm:$0xff] }
  0x2e   : > { %1331 = vmatprep.subr.bf16.mxu1 %v1330_v18  ;;  %v354_v43 = vld [vmem:[#allocation2 + $0xe8] sm:$0xff]  ;;  %v355_v44 = vld [vmem:[#allocation2 + $0xf0] sm:$0xff]  ;;  %v356_v45 = vld [vmem:[#allocation2 + $0xf8] sm:$0xff] }
  0x2f   : > { %v651_v46 = vld [vmem:[%s1721_s3 + $0x70] sm:$0xff]  ;;  %v652_v47 = vld [vmem:[%s1721_s3 + $0x78] sm:$0xff]  ;;  %v1573_v49 = vld [vmem:[%s1720_s2] ss:$0 sm:$0xff] }
  0x30   : > { %1153 = vmatmul.mubr.f32.gmra.mrb[4].mxu0 %v330_v19  ;;  %v1334_v48 = vpack.c.bf16 %v652_v47, %v651_v46 }
  0x31   : > { %1155 = vmatprep.mubr.f32.mxu0 %v331_v20  ;;  %1333 = vmatpush3.bf16.msra.mxu1 %v1330_v18 }
  0x32   : > { %1335 = vmatprep.subr.bf16.mxu1 %v1334_v48 }
  0x34   : > { %1156 = vmatmul.mubr.f32.gmra.mrb[6].mxu0 %v332_v21 }
  0x35   : > { %1158 = vmatprep.mubr.f32.mxu0 %v333_v22  ;;  %1337 = vmatpush3.bf16.msra.mxu1 %v1334_v48 }
  0x38   : > { %1159 = vmatmul.mubr.f32.gmra.mrb[8].mxu0 %v334_v23 }
  0x39   : > { %1161 = vmatprep.mubr.f32.mxu0 %v335_v24 }
  0x3c   : > { %1162 = vmatmul.mubr.f32.gmra.mrb[10].mxu0 %v336_v25 }
  0x3d   : > { %1164 = vmatprep.mubr.f32.mxu0 %v337_v26 }
  0x40   : > { %1165 = vmatmul.mubr.f32.gmra.mrb[12].mxu0 %v338_v27 }
  0x41   : > { %1167 = vmatprep.mubr.f32.mxu0 %v339_v28 }
  0x44   : > { %1168 = vmatmul.mubr.f32.gmra.mrb[14].mxu0 %v340_v29 }
  0x45   : > { %1170 = vmatprep.mubr.f32.mxu0 %v341_v30 }
  0x48   : > { %1171 = vmatmul.mubr.f32.gmra.mrb[16].mxu0 %v342_v31 }
  0x49   : > { %1173 = vmatprep.mubr.f32.mxu0 %v343_v32 }
  0x4c   : > { %1174 = vmatmul.mubr.f32.gmra.mrb[18].mxu0 %v344_v33 }
  0x4d   : > { %1176 = vmatprep.mubr.f32.mxu0 %v345_v34 }
  0x50   : > { %1177 = vmatmul.mubr.f32.gmra.mrb[20].mxu0 %v346_v35 }
  0x51   : > { %1179 = vmatprep.mubr.f32.mxu0 %v347_v36 }
  0x54   : > { %1180 = vmatmul.mubr.f32.gmra.mrb[22].mxu0 %v348_v37 }
  0x55   : > { %1182 = vmatprep.mubr.f32.mxu0 %v349_v38 }
  0x58   : > { %1183 = vmatmul.mubr.f32.gmra.mrb[24].mxu0 %v350_v39 }
  0x59   : > { %1185 = vmatprep.mubr.f32.mxu0 %v351_v40 }
  0x5c   : > { %1186 = vmatmul.mubr.f32.gmra.mrb[26].mxu0 %v352_v41 }
  0x5d   : > { %1188 = vmatprep.mubr.f32.mxu0 %v353_v42 }
  0x60   : > { %1189 = vmatmul.mubr.f32.gmra.mrb[28].mxu0 %v354_v43 }
  0x61   : > { %1191 = vmatprep.mubr.f32.mxu0 %v355_v44 }
  0x64   : > { %1192 = vmatmul.mubr.f32.gmra.mrb[30].mxu0 %v356_v45 }
  0xfb   : > { %v1148_v50 = vpop.f32.mrb[0].mxu0 }
  0xfc   : > { %v452_v51 = vadd.f32 %v1148_v50, %v1573_v49  ;;  %v446_v52 = vpop.f32.mrb[1].mxu0 }
  0xfd   : > { %v447_v53 = vadd.f32 %v1573_v49, %v446_v52 }
  0xfe   : > { %v606_v56 = vmax.f32 %v452_v51, 0.0 }
  0xff   : > { %v1151_v54 = vpop.f32.mrb[2].mxu0  ;;  %v605_v55 = vmax.f32 %v447_v53, 0.0 }
 0x100   : > { %v462_v57 = vadd.f32 %v1151_v54, %v1573_v49  ;;  %v456_v58 = vpop.f32.mrb[3].mxu0 }
 0x101   : > { %v457_v59 = vadd.f32 %v1573_v49, %v456_v58  ;;  %1226 = vmatprep.mubr.f32.mxu1 %v605_v55 }
 0x102   : > { %1227 = vmatmul.mubr.f32.vlgmr.msra.gmra.mrb[0].mxu1 %v606_v56  ;;  %v608_v62 = vmax.f32 %v462_v57, 0.0 }
 0x103   : > { %v607_v60 = vmax.f32 %v457_v59, 0.0  ;;  %v1154_v61 = vpop.f32.mrb[4].mxu0 }
 0x104   : > { %v472_v63 = vadd.f32 %v1154_v61, %v1573_v49  ;;  %v466_v0 = vpop.f32.mrb[5].mxu0 }
 0x105   : > { %v467_v1 = vadd.f32 %v1573_v49, %v466_v0  ;;  %1229 = vmatprep.mubr.f32.mxu1 %v607_v60 }
 0x106   : > { %1230 = vmatmul.mubr.f32.gmra.mrb[2].mxu1 %v608_v62  ;;  %v610_v4 = vmax.f32 %v472_v63, 0.0 }
 0x107   : > { %v609_v2 = vmax.f32 %v467_v1, 0.0  ;;  %v1157_v3 = vpop.f32.mrb[6].mxu0 }
 0x108   : > { %v482_v5 = vadd.f32 %v1157_v3, %v1573_v49  ;;  %v476_v6 = vpop.f32.mrb[7].mxu0 }
 0x109   : > { %v477_v7 = vadd.f32 %v1573_v49, %v476_v6  ;;  %1232 = vmatprep.mubr.f32.mxu1 %v609_v2 }
 0x10a   : > { %1233 = vmatmul.mubr.f32.gmra.mrb[4].mxu1 %v610_v4  ;;  %v612_v10 = vmax.f32 %v482_v5, 0.0 }
 0x10b   : > { %v611_v8 = vmax.f32 %v477_v7, 0.0  ;;  %v1160_v9 = vpop.f32.mrb[8].mxu0 }
 0x10c   : > { %v492_v11 = vadd.f32 %v1160_v9, %v1573_v49  ;;  %v486_v12 = vpop.f32.mrb[9].mxu0 }
 0x10d   : > { %v487_v13 = vadd.f32 %v1573_v49, %v486_v12  ;;  %1235 = vmatprep.mubr.f32.mxu1 %v611_v8 }
 0x10e   : > { %1236 = vmatmul.mubr.f32.gmra.mrb[6].mxu1 %v612_v10  ;;  %v614_v16 = vmax.f32 %v492_v11, 0.0 }
 0x10f   : > { %v613_v14 = vmax.f32 %v487_v13, 0.0  ;;  %v1163_v15 = vpop.f32.mrb[10].mxu0 }
 0x110   : > { %v502_v17 = vadd.f32 %v1163_v15, %v1573_v49  ;;  %v496_v18 = vpop.f32.mrb[11].mxu0 }
 0x111   : > { %v497_v19 = vadd.f32 %v1573_v49, %v496_v18  ;;  %1238 = vmatprep.mubr.f32.mxu1 %v613_v14 }
 0x112   : > { %1239 = vmatmul.mubr.f32.gmra.mrb[8].mxu1 %v614_v16  ;;  %v616_v22 = vmax.f32 %v502_v17, 0.0 }
 0x113   : > { %v615_v20 = vmax.f32 %v497_v19, 0.0  ;;  %v1166_v21 = vpop.f32.mrb[12].mxu0  ;;  %v1610_v19 = vld [vmem:[%s1722_s4] ss:$0 sm:$0xff] }
 0x114   : > { %v512_v23 = vadd.f32 %v1166_v21, %v1573_v49  ;;  %v506_v24 = vpop.f32.mrb[13].mxu0 }
 0x115   : > { %v507_v25 = vadd.f32 %v1573_v49, %v506_v24  ;;  %1241 = vmatprep.mubr.f32.mxu1 %v615_v20 }
 0x116   : > { %1242 = vmatmul.mubr.f32.gmra.mrb[10].mxu1 %v616_v22  ;;  %v618_v28 = vmax.f32 %v512_v23, 0.0 }
 0x117   : > { %v617_v26 = vmax.f32 %v507_v25, 0.0  ;;  %v1169_v27 = vpop.f32.mrb[14].mxu0 }
 0x118   : > { %v522_v29 = vadd.f32 %v1169_v27, %v1573_v49  ;;  %v516_v30 = vpop.f32.mrb[15].mxu0 }
 0x119   : > { %v517_v31 = vadd.f32 %v1573_v49, %v516_v30  ;;  %1244 = vmatprep.mubr.f32.mxu1 %v617_v26 }
 0x11a   : > { %1245 = vmatmul.mubr.f32.gmra.mrb[12].mxu1 %v618_v28  ;;  %v620_v34 = vmax.f32 %v522_v29, 0.0 }
 0x11b   : > { %v619_v32 = vmax.f32 %v517_v31, 0.0  ;;  %v1172_v33 = vpop.f32.mrb[16].mxu0 }
 0x11c   : > { %v532_v35 = vadd.f32 %v1172_v33, %v1573_v49  ;;  %v526_v36 = vpop.f32.mrb[17].mxu0 }
 0x11d   : > { %v527_v37 = vadd.f32 %v1573_v49, %v526_v36  ;;  %1247 = vmatprep.mubr.f32.mxu1 %v619_v32 }
 0x11e   : > { %1248 = vmatmul.mubr.f32.gmra.mrb[14].mxu1 %v620_v34  ;;  %v622_v40 = vmax.f32 %v532_v35, 0.0 }
 0x11f   : > { %v621_v38 = vmax.f32 %v527_v37, 0.0  ;;  %v1175_v39 = vpop.f32.mrb[18].mxu0 }
 0x120   : > { %v542_v41 = vadd.f32 %v1175_v39, %v1573_v49  ;;  %v536_v42 = vpop.f32.mrb[19].mxu0 }
 0x121   : > { %v537_v43 = vadd.f32 %v1573_v49, %v536_v42  ;;  %1250 = vmatprep.mubr.f32.mxu1 %v621_v38 }
 0x122   : > { %1251 = vmatmul.mubr.f32.gmra.mrb[16].mxu1 %v622_v40  ;;  %v624_v46 = vmax.f32 %v542_v41, 0.0 }
 0x123   : > { %v623_v44 = vmax.f32 %v537_v43, 0.0  ;;  %v1178_v45 = vpop.f32.mrb[20].mxu0 }
 0x124   : > { %v552_v47 = vadd.f32 %v1178_v45, %v1573_v49  ;;  %v546_v48 = vpop.f32.mrb[21].mxu0 }
 0x125   : > { %v547_v50 = vadd.f32 %v1573_v49, %v546_v48  ;;  %1253 = vmatprep.mubr.f32.mxu1 %v623_v44 }
 0x126   : > { %1254 = vmatmul.mubr.f32.gmra.mrb[18].mxu1 %v624_v46  ;;  %v626_v53 = vmax.f32 %v552_v47, 0.0 }
 0x127   : > { %v625_v51 = vmax.f32 %v547_v50, 0.0  ;;  %v1181_v52 = vpop.f32.mrb[22].mxu0 }
 0x128   : > { %v562_v54 = vadd.f32 %v1181_v52, %v1573_v49  ;;  %v556_v55 = vpop.f32.mrb[23].mxu0 }
 0x129   : > { %v557_v56 = vadd.f32 %v1573_v49, %v556_v55  ;;  %1256 = vmatprep.mubr.f32.mxu1 %v625_v51 }
 0x12a   : > { %1257 = vmatmul.mubr.f32.gmra.mrb[20].mxu1 %v626_v53  ;;  %v628_v59 = vmax.f32 %v562_v54, 0.0 }
 0x12b   : > { %v627_v57 = vmax.f32 %v557_v56, 0.0  ;;  %v1184_v58 = vpop.f32.mrb[24].mxu0 }
 0x12c   : > { %v572_v60 = vadd.f32 %v1184_v58, %v1573_v49  ;;  %v566_v61 = vpop.f32.mrb[25].mxu0 }
 0x12d   : > { %v567_v62 = vadd.f32 %v1573_v49, %v566_v61  ;;  %1259 = vmatprep.mubr.f32.mxu1 %v627_v57 }
 0x12e   : > { %1260 = vmatmul.mubr.f32.gmra.mrb[22].mxu1 %v628_v59  ;;  %v630_v1 = vmax.f32 %v572_v60, 0.0 }
 0x12f   : > { %v629_v63 = vmax.f32 %v567_v62, 0.0  ;;  %v1187_v0 = vpop.f32.mrb[26].mxu0 }
 0x130   : > { %v582_v2 = vadd.f32 %v1187_v0, %v1573_v49  ;;  %v576_v3 = vpop.f32.mrb[27].mxu0 }
 0x131   : > { %v577_v4 = vadd.f32 %v1573_v49, %v576_v3  ;;  %1262 = vmatprep.mubr.f32.mxu1 %v629_v63 }
 0x132   : > { %1263 = vmatmul.mubr.f32.gmra.mrb[24].mxu1 %v630_v1  ;;  %v632_v7 = vmax.f32 %v582_v2, 0.0 }
 0x133   : > { %v631_v5 = vmax.f32 %v577_v4, 0.0  ;;  %v1190_v6 = vpop.f32.mrb[28].mxu0 }
 0x134   : > { %v592_v8 = vadd.f32 %v1190_v6, %v1573_v49  ;;  %v586_v9 = vpop.f32.mrb[29].mxu0 }
 0x135   : > { %v587_v10 = vadd.f32 %v1573_v49, %v586_v9  ;;  %1265 = vmatprep.mubr.f32.mxu1 %v631_v5 }
 0x136   : > { %1266 = vmatmul.mubr.f32.gmra.mrb[26].mxu1 %v632_v7  ;;  %v634_v13 = vmax.f32 %v592_v8, 0.0 }
 0x137   : > { %v633_v11 = vmax.f32 %v587_v10, 0.0  ;;  %v1193_v12 = vpop.f32.mrb[30].mxu0 }
 0x138   : > { %v602_v14 = vadd.f32 %v1193_v12, %v1573_v49  ;;  %v596_v15 = vpop.f32.mrb[31].mxu0 }
 0x139   : > { %v597_v16 = vadd.f32 %v1573_v49, %v596_v15  ;;  %1268 = vmatprep.mubr.f32.mxu1 %v633_v11 }
 0x13a   : > { %1269 = vmatmul.mubr.f32.gmra.mrb[28].mxu1 %v634_v13  ;;  %v636_v18 = vmax.f32 %v602_v14, 0.0 }
 0x13b   : > { %v635_v17 = vmax.f32 %v597_v16, 0.0 }
 0x13d   : > { %1271 = vmatprep.mubr.f32.mxu1 %v635_v17 }
 0x13e   : > { %1272 = vmatmul.mubr.f32.gmra.mrb[30].mxu1 %v636_v18 }
 0x1d5   : > { %v1228_v20 = vpop.f32.mrb[0].mxu1 }
 0x1d6   : > { %v732_v21 = vadd.f32 %v1228_v20, %v1610_v19  ;;  %v726_v22 = vpop.f32.mrb[1].mxu1 }
 0x1d7   : > { %v727_v49 = vadd.f32 %v1610_v19, %v726_v22 }
 0x1d8   : > { %v886_v23 = vmax.f32 %v732_v21, 0.0 }
 0x1d9   : > { %v885_v24 = vmax.f32 %v727_v49, 0.0  ;;  %v1231_v25 = vpop.f32.mrb[2].mxu1 }
 0x1da   : > { %918 = vst.msk [vmem:[%s1618_s29 + $0x8] sm:$0xff] %vm292_vm0, %v886_v23  ;;  %v742_v26 = vadd.f32 %v1231_v25, %v1610_v19  ;;  %v736_v27 = vpop.f32.mrb[3].mxu1 }
 0x1db   : > { %917 = vst.msk [vmem:[%s1618_s29] sm:$0xff] %vm292_vm0, %v885_v24  ;;  %v737_v28 = vadd.f32 %v1610_v19, %v736_v27 }
 0x1dc   : > { %v888_v29 = vmax.f32 %v742_v26, 0.0 }
 0x1dd   : > { %v887_v30 = vmax.f32 %v737_v28, 0.0  ;;  %v1234_v31 = vpop.f32.mrb[4].mxu1 }
 0x1de   : > { %920 = vst.msk [vmem:[%s1618_s29 + $0x18] sm:$0xff] %vm292_vm0, %v888_v29  ;;  %v752_v32 = vadd.f32 %v1234_v31, %v1610_v19  ;;  %v746_v33 = vpop.f32.mrb[5].mxu1 }
 0x1df   : > { %919 = vst.msk [vmem:[%s1618_s29 + $0x10] sm:$0xff] %vm292_vm0, %v887_v30  ;;  %v747_v34 = vadd.f32 %v1610_v19, %v746_v33 }
 0x1e0   : > { %v890_v35 = vmax.f32 %v752_v32, 0.0 }
 0x1e1   : > { %v889_v36 = vmax.f32 %v747_v34, 0.0  ;;  %v1237_v37 = vpop.f32.mrb[6].mxu1 }
 0x1e2   : > { %922 = vst.msk [vmem:[%s1618_s29 + $0x28] sm:$0xff] %vm292_vm0, %v890_v35  ;;  %v762_v38 = vadd.f32 %v1237_v37, %v1610_v19  ;;  %v756_v39 = vpop.f32.mrb[7].mxu1 }
 0x1e3   : > { %921 = vst.msk [vmem:[%s1618_s29 + $0x20] sm:$0xff] %vm292_vm0, %v889_v36  ;;  %v757_v40 = vadd.f32 %v1610_v19, %v756_v39 }
 0x1e4   : > { %v892_v41 = vmax.f32 %v762_v38, 0.0 }
 0x1e5   : > { %v891_v42 = vmax.f32 %v757_v40, 0.0  ;;  %v1240_v43 = vpop.f32.mrb[8].mxu1 }
 0x1e6   : > { %924 = vst.msk [vmem:[%s1618_s29 + $0x38] sm:$0xff] %vm292_vm0, %v892_v41  ;;  %v772_v44 = vadd.f32 %v1240_v43, %v1610_v19  ;;  %v766_v45 = vpop.f32.mrb[9].mxu1 }
 0x1e7   : > { %923 = vst.msk [vmem:[%s1618_s29 + $0x30] sm:$0xff] %vm292_vm0, %v891_v42  ;;  %v767_v46 = vadd.f32 %v1610_v19, %v766_v45 }
 0x1e8   : > { %v894_v47 = vmax.f32 %v772_v44, 0.0 }
 0x1e9   : > { %v893_v48 = vmax.f32 %v767_v46, 0.0  ;;  %v1243_v50 = vpop.f32.mrb[10].mxu1 }
 0x1ea   : > { %926 = vst.msk [vmem:[%s1618_s29 + $0x48] sm:$0xff] %vm292_vm0, %v894_v47  ;;  %v782_v51 = vadd.f32 %v1243_v50, %v1610_v19  ;;  %v776_v52 = vpop.f32.mrb[11].mxu1 }
 0x1eb   : > { %925 = vst.msk [vmem:[%s1618_s29 + $0x40] sm:$0xff] %vm292_vm0, %v893_v48  ;;  %v777_v53 = vadd.f32 %v1610_v19, %v776_v52 }
 0x1ec   : > { %v896_v54 = vmax.f32 %v782_v51, 0.0 }
 0x1ed   : > { %v895_v55 = vmax.f32 %v777_v53, 0.0  ;;  %v1246_v56 = vpop.f32.mrb[12].mxu1 }
 0x1ee   : > { %928 = vst.msk [vmem:[%s1618_s29 + $0x58] sm:$0xff] %vm292_vm0, %v896_v54  ;;  %v792_v57 = vadd.f32 %v1246_v56, %v1610_v19  ;;  %v786_v58 = vpop.f32.mrb[13].mxu1 }
 0x1ef   : > { %927 = vst.msk [vmem:[%s1618_s29 + $0x50] sm:$0xff] %vm292_vm0, %v895_v55  ;;  %v787_v59 = vadd.f32 %v1610_v19, %v786_v58 }
 0x1f0   : > { %v898_v60 = vmax.f32 %v792_v57, 0.0 }
 0x1f1   : > { %v897_v61 = vmax.f32 %v787_v59, 0.0  ;;  %v1249_v62 = vpop.f32.mrb[14].mxu1 }
 0x1f2   : > { %930 = vst.msk [vmem:[%s1618_s29 + $0x68] sm:$0xff] %vm292_vm0, %v898_v60  ;;  %v802_v63 = vadd.f32 %v1249_v62, %v1610_v19  ;;  %v796_v0 = vpop.f32.mrb[15].mxu1 }
 0x1f3   : > { %929 = vst.msk [vmem:[%s1618_s29 + $0x60] sm:$0xff] %vm292_vm0, %v897_v61  ;;  %v797_v1 = vadd.f32 %v1610_v19, %v796_v0 }
 0x1f4   : > { %v900_v2 = vmax.f32 %v802_v63, 0.0 }
 0x1f5   : > { %v899_v3 = vmax.f32 %v797_v1, 0.0  ;;  %v1252_v4 = vpop.f32.mrb[16].mxu1 }
 0x1f6   : > { %932 = vst.msk [vmem:[%s1618_s29 + $0x78] sm:$0xff] %vm292_vm0, %v900_v2  ;;  %v812_v5 = vadd.f32 %v1252_v4, %v1610_v19  ;;  %v806_v6 = vpop.f32.mrb[17].mxu1 }
 0x1f7   : > { %931 = vst.msk [vmem:[%s1618_s29 + $0x70] sm:$0xff] %vm292_vm0, %v899_v3  ;;  %v807_v7 = vadd.f32 %v1610_v19, %v806_v6 }
 0x1f8   : > { %v902_v8 = vmax.f32 %v812_v5, 0.0 }
 0x1f9   : > { %v901_v9 = vmax.f32 %v807_v7, 0.0  ;;  %v1255_v10 = vpop.f32.mrb[18].mxu1 }
 0x1fa   : > { %934 = vst.msk [vmem:[%s1618_s29 + $0x88] sm:$0xff] %vm292_vm0, %v902_v8  ;;  %v822_v11 = vadd.f32 %v1255_v10, %v1610_v19  ;;  %v816_v12 = vpop.f32.mrb[19].mxu1 }
 0x1fb   : > { %933 = vst.msk [vmem:[%s1618_s29 + $0x80] sm:$0xff] %vm292_vm0, %v901_v9  ;;  %v817_v13 = vadd.f32 %v1610_v19, %v816_v12 }
 0x1fc   : > { %v904_v14 = vmax.f32 %v822_v11, 0.0 }
 0x1fd   : > { %v903_v15 = vmax.f32 %v817_v13, 0.0  ;;  %v1258_v16 = vpop.f32.mrb[20].mxu1 }
 0x1fe   : > { %936 = vst.msk [vmem:[%s1618_s29 + $0x98] sm:$0xff] %vm292_vm0, %v904_v14  ;;  %v832_v17 = vadd.f32 %v1258_v16, %v1610_v19  ;;  %v826_v18 = vpop.f32.mrb[21].mxu1 }
 0x1ff   : > { %935 = vst.msk [vmem:[%s1618_s29 + $0x90] sm:$0xff] %vm292_vm0, %v903_v15  ;;  %v827_v20 = vadd.f32 %v1610_v19, %v826_v18 }
 0x200   : > { %v906_v21 = vmax.f32 %v832_v17, 0.0 }
 0x201   : > { %v905_v22 = vmax.f32 %v827_v20, 0.0  ;;  %v1261_v49 = vpop.f32.mrb[22].mxu1 }
 0x202   : > { %938 = vst.msk [vmem:[%s1618_s29 + $0xa8] sm:$0xff] %vm292_vm0, %v906_v21  ;;  %v842_v23 = vadd.f32 %v1261_v49, %v1610_v19  ;;  %v836_v24 = vpop.f32.mrb[23].mxu1 }
 0x203   : > { %937 = vst.msk [vmem:[%s1618_s29 + $0xa0] sm:$0xff] %vm292_vm0, %v905_v22  ;;  %v837_v25 = vadd.f32 %v1610_v19, %v836_v24 }
 0x204   : > { %v908_v26 = vmax.f32 %v842_v23, 0.0 }
 0x205   : > { %v907_v27 = vmax.f32 %v837_v25, 0.0  ;;  %v1264_v28 = vpop.f32.mrb[24].mxu1 }
 0x206   : > { %940 = vst.msk [vmem:[%s1618_s29 + $0xb8] sm:$0xff] %vm292_vm0, %v908_v26  ;;  %v852_v29 = vadd.f32 %v1264_v28, %v1610_v19  ;;  %v846_v30 = vpop.f32.mrb[25].mxu1 }
 0x207   : > { %939 = vst.msk [vmem:[%s1618_s29 + $0xb0] sm:$0xff] %vm292_vm0, %v907_v27  ;;  %v847_v31 = vadd.f32 %v1610_v19, %v846_v30 }
 0x208   : > { %v910_v32 = vmax.f32 %v852_v29, 0.0 }
 0x209   : > { %v909_v33 = vmax.f32 %v847_v31, 0.0  ;;  %v1267_v34 = vpop.f32.mrb[26].mxu1 }
 0x20a   : > { %942 = vst.msk [vmem:[%s1618_s29 + $0xc8] sm:$0xff] %vm292_vm0, %v910_v32  ;;  %v862_v35 = vadd.f32 %v1267_v34, %v1610_v19  ;;  %v856_v36 = vpop.f32.mrb[27].mxu1 }
 0x20b   : > { %941 = vst.msk [vmem:[%s1618_s29 + $0xc0] sm:$0xff] %vm292_vm0, %v909_v33  ;;  %v857_v37 = vadd.f32 %v1610_v19, %v856_v36 }
 0x20c   : > { %v912_v38 = vmax.f32 %v862_v35, 0.0 }
 0x20d   : > { %v911_v39 = vmax.f32 %v857_v37, 0.0  ;;  %v1270_v40 = vpop.f32.mrb[28].mxu1 }
 0x20e   : > { %944 = vst.msk [vmem:[%s1618_s29 + $0xd8] sm:$0xff] %vm292_vm0, %v912_v38  ;;  %v872_v41 = vadd.f32 %v1270_v40, %v1610_v19  ;;  %v866_v42 = vpop.f32.mrb[29].mxu1 }
 0x20f   : > { %943 = vst.msk [vmem:[%s1618_s29 + $0xd0] sm:$0xff] %vm292_vm0, %v911_v39  ;;  %v867_v43 = vadd.f32 %v1610_v19, %v866_v42 }
 0x210   : > { %v914_v44 = vmax.f32 %v872_v41, 0.0 }
 0x211   : > { %v913_v45 = vmax.f32 %v867_v43, 0.0  ;;  %v1273_v46 = vpop.f32.mrb[30].mxu1 }
 0x212   : > { %946 = vst.msk [vmem:[%s1618_s29 + $0xe8] sm:$0xff] %vm292_vm0, %v914_v44  ;;  %v882_v47 = vadd.f32 %v1273_v46, %v1610_v19  ;;  %v876_v48 = vpop.f32.mrb[31].mxu1 }
 0x213   : > { %945 = vst.msk [vmem:[%s1618_s29 + $0xe0] sm:$0xff] %vm292_vm0, %v913_v45  ;;  %v877_v50 = vadd.f32 %v1610_v19, %v876_v48 }
 0x214   : > { %v916_v51 = vmax.f32 %v882_v47, 0.0 }
 0x215   : > { %v915_v52 = vmax.f32 %v877_v50, 0.0 }
 0x216   : > { %948 = vst.msk [vmem:[%s1618_s29 + $0xf8] sm:$0xff] %vm292_vm0, %v916_v51 }
 0x217   : > { %947 = vst.msk [vmem:[%s1618_s29 + $0xf0] sm:$0xff] %vm292_vm0, %v915_v52 }
 0x218 PF: > { %s15_s18 = sadd.s32 1, %s1353_s18  }
 0x219   : > { %p12_p4 = scmp.ge.s32.totalorder %s15_s18, 4  }
 0x21b   :  { %14 = sbr.rel (!%p12_p4) target bundleno = 1 (0x1), region = 70 }

</bundles_post_ra>
